<compile_context>
chip_gen: v7x
topology: tpu7x:2x2x1
jax: 0.10.0
libtpu: 0.0.40
codegen_flags: <defaults>
</compile_context>

<pallas_src>
import jax
import jax.numpy as jnp
from jax.experimental import pallas as pl
from jax.experimental.pallas import tpu as pltpu


def _nw_kernel(w_ref, q_ref, k_ref, v_ref, o_ref):
    # w_ref: SMEM (1,), q_ref: (TM,1), k_ref/v_ref: (TM,K), o_ref: (TM,1)
    w = w_ref[0]
    c = -0.5 * w * w                     # -((q-k)*w)**2/2  ==  c * (q-k)**2
    q = q_ref[...]                       # (TM, 1), broadcast across lanes
    k = k_ref[...]                       # (TM, K)
    v = v_ref[...]                       # (TM, K)

    d = q - k
    scores = c * (d * d)                 # (TM, K), all <= 0

    # row-wise numerically-stable softmax over K (dim=1), normalization deferred
    m = jnp.max(scores, axis=1, keepdims=True)
    e = jnp.exp(scores - m)              # EUP
    denom = jnp.sum(e, axis=1, keepdims=True)
    num = jnp.sum(e * v, axis=1, keepdims=True)

    o_ref[...] = num * pl.reciprocal(denom, approx=False)


def _round_up(x, m):
    return ((x + m - 1) // m) * m


def nw_forward(queries, keys, values, w, *, vmem_limit_bytes=48 * 1024 * 1024):
    """queries: (N,), keys: (N,K), values: (N,K), w: (1,) -> (N,)"""
    N, K = keys.shape
    q2 = queries.astype(jnp.float32).reshape(N, 1)
    keys = keys.astype(jnp.float32)
    values = values.astype(jnp.float32)
    w = jnp.asarray(w, jnp.float32).reshape(1)

    # Row tile: multiple of 8, capped at 1024, and sized so double-buffered
    # keys+values (2 arrays * 2 buffers * TM * K * 4 B) fit ~60% of the VMEM limit.
    kv_budget = (vmem_limit_bytes * 3) // 5
    max_tm_for_vmem = max(8, (kv_budget // (16 * K)) // 8 * 8)
    tm = min(1024, max_tm_for_vmem)
    if N <= tm:
        tm = _round_up(N, 8)             # single grid step for small N

    n_pad = _round_up(N, tm)
    if n_pad != N:
        pad = n_pad - N
        q2 = jnp.pad(q2, ((0, pad), (0, 0)))
        keys = jnp.pad(keys, ((0, pad), (0, 0)))
        values = jnp.pad(values, ((0, pad), (0, 0)))

    out = pl.pallas_call(
        _nw_kernel,
        out_shape=jax.ShapeDtypeStruct((n_pad, 1), jnp.float32),
        grid=(n_pad // tm,),
        in_specs=[
            pl.BlockSpec(memory_space=pltpu.MemorySpace.SMEM),   # w scalar
            pl.BlockSpec((tm, 1), lambda i: (i, 0)),             # queries
            pl.BlockSpec((tm, K), lambda i: (i, 0)),             # keys
            pl.BlockSpec((tm, K), lambda i: (i, 0)),             # values
        ],
        out_specs=pl.BlockSpec((tm, 1), lambda i: (i, 0)),
        compiler_params=pltpu.CompilerParams(
            dimension_semantics=("parallel",),                   # megacore sharding
            vmem_limit_bytes=vmem_limit_bytes,                   # safe on v5e/v6e/v7x
        ),
    )(w, q2, keys, values)
    return out[:N, 0]


def _f(x):
    return 2.0 * jnp.sin(x) + x ** 0.8


def _reference(queries, keys, values, w):
    q = queries[:, None]
    scores = -((q - keys) * w) ** 2 / 2.0
    attn = jax.nn.softmax(scores, axis=1)
    return jnp.sum(attn * values, axis=1)


if __name__ == "__main__":
    key = jax.random.PRNGKey(0)
    k_xtrain, k_noise, k_w = jax.random.split(key, 3)

    # Mirror the original script (small shapes): n_train = n_test = 50.
    n_train = 50
    x_train = jnp.sort(jax.random.uniform(k_xtrain, (n_train,)) * 5.0)
    y_train = _f(x_train) + 0.5 * jax.random.normal(k_noise, (n_train,))

    x_test = jnp.arange(0.0, 5.0, 0.1, dtype=jnp.float32)      # (50,)
    n_test = x_test.shape[0]

    keys = jnp.tile(x_train[None, :], (n_test, 1))              # (50, 50)
    values = jnp.tile(y_train[None, :], (n_test, 1))            # (50, 50)

    # deterministic parameter init, same shape as nn.Parameter(torch.rand((1,)))
    w = jax.random.uniform(k_w, (1,), dtype=jnp.float32)

    out = nw_forward(x_test, keys, values, w)
    out = jax.block_until_ready(out)

    ref = _reference(x_test, keys, values, w[0])
    assert out.shape == (n_test,)
    assert jnp.allclose(out, ref, atol=1e-5, rtol=1e-5)

    print("KERNEL_OK")
</pallas_src>

<mosaic_0001>
module attributes {stable_mosaic.version = 11 : i64} {
  func.func @_nw_kernel(%arg0: i32, %arg1: memref<1xf32, #tpu.memory_space<smem>>, %arg2: memref<56x1xf32, #tpu.memory_space<vmem>>, %arg3: memref<56x50xf32, #tpu.memory_space<vmem>>, %arg4: memref<56x50xf32, #tpu.memory_space<vmem>>, %arg5: memref<56x1xf32, #tpu.memory_space<vmem>>) attributes {dimension_semantics = [#tpu.dimension_semantics<parallel>], iteration_bounds = array<i64: 1>, scalar_prefetch = 0 : i64, scratch_operands = 0 : i64, tpu.core_type = #tpu.core_type<tc>, window_params = [{transform_indices = @transform_0, window_bounds = array<i64: 1>}, {transform_indices = @transform_1, window_bounds = array<i64: 56, 1>}, {transform_indices = @transform_2, window_bounds = array<i64: 56, 50>}, {transform_indices = @transform_3, window_bounds = array<i64: 56, 50>}, {transform_indices = @transform_4, window_bounds = array<i64: 56, 1>}]} {
    %c0 = arith.constant 0 : index
    %0 = memref.load %arg1[%c0] : memref<1xf32, #tpu.memory_space<smem>>
    %cst = arith.constant -5.000000e-01 : f32
    %1 = arith.mulf %cst, %0 : f32
    %2 = arith.mulf %1, %0 : f32
    %c0_0 = arith.constant 0 : index
    %c0_1 = arith.constant 0 : index
    %3 = vector.load %arg2[%c0_0, %c0_1] : memref<56x1xf32, #tpu.memory_space<vmem>>, vector<56x1xf32>
    %c0_2 = arith.constant 0 : index
    %c0_3 = arith.constant 0 : index
    %4 = vector.load %arg3[%c0_2, %c0_3] : memref<56x50xf32, #tpu.memory_space<vmem>>, vector<56x50xf32>
    %c0_4 = arith.constant 0 : index
    %c0_5 = arith.constant 0 : index
    %5 = vector.load %arg4[%c0_4, %c0_5] : memref<56x50xf32, #tpu.memory_space<vmem>>, vector<56x50xf32>
    %6 = vector.broadcast %3 : vector<56x1xf32> to vector<56x50xf32>
    %7 = arith.subf %6, %4 : vector<56x50xf32>
    %8 = arith.mulf %7, %7 : vector<56x50xf32>
    %9 = vector.broadcast %2 : f32 to vector<56x50xf32>
    %10 = arith.mulf %9, %8 : vector<56x50xf32>
    %cst_6 = arith.constant dense<0xFF800000> : vector<56xf32>
    %11 = vector.multi_reduction <maximumf>, %10, %cst_6 [1] : vector<56x50xf32> to vector<56xf32>
    %12 = vector.shape_cast %11 : vector<56xf32> to vector<56x1xf32>
    %13 = vector.broadcast %12 : vector<56x1xf32> to vector<56x50xf32>
    %14 = arith.subf %10, %13 : vector<56x50xf32>
    %15 = math.exp %14 : vector<56x50xf32>
    %cst_7 = arith.constant dense<0.000000e+00> : vector<56xf32>
    %16 = vector.multi_reduction <add>, %15, %cst_7 [1] : vector<56x50xf32> to vector<56xf32>
    %17 = vector.shape_cast %16 : vector<56xf32> to vector<56x1xf32>
    %18 = arith.mulf %15, %5 : vector<56x50xf32>
    %cst_8 = arith.constant dense<0.000000e+00> : vector<56xf32>
    %19 = vector.multi_reduction <add>, %18, %cst_8 [1] : vector<56x50xf32> to vector<56xf32>
    %20 = vector.shape_cast %19 : vector<56xf32> to vector<56x1xf32>
    %21 = tpu.reciprocal %17 : vector<56x1xf32> -> vector<56x1xf32>
    %22 = arith.mulf %20, %21 : vector<56x1xf32>
    %c0_9 = arith.constant 0 : index
    %c0_10 = arith.constant 0 : index
    %23 = vector.load %arg5[%c0_9, %c0_10] : memref<56x1xf32, #tpu.memory_space<vmem>>, vector<56x1xf32>
    tpu.vector_store %arg5[%c0_9, %c0_10], %22 {strides = array<i32>} : memref<56x1xf32, #tpu.memory_space<vmem>>, vector<56x1xf32>,
    return
  }
  func.func @transform_0(%arg0: i32) -> i32 {
    %c0_i32 = arith.constant 0 : i32
    %c0_i32_0 = arith.constant 0 : i32
    return %c0_i32 : i32
  }
  func.func @transform_1(%arg0: i32) -> (i32, i32) {
    %c0_i32 = arith.constant 0 : i32
    %c0_i32_0 = arith.constant 0 : i32
    return %arg0, %c0_i32 : i32, i32
  }
  func.func @transform_2(%arg0: i32) -> (i32, i32) {
    %c0_i32 = arith.constant 0 : i32
    %c0_i32_0 = arith.constant 0 : i32
    return %arg0, %c0_i32 : i32, i32
  }
  func.func @transform_3(%arg0: i32) -> (i32, i32) {
    %c0_i32 = arith.constant 0 : i32
    %c0_i32_0 = arith.constant 0 : i32
    return %arg0, %c0_i32 : i32, i32
  }
  func.func @transform_4(%arg0: i32) -> (i32, i32) {
    %c0_i32 = arith.constant 0 : i32
    %c0_i32_0 = arith.constant 0 : i32
    return %arg0, %c0_i32 : i32, i32
  }
}

</mosaic_0001>

<bundles_post_ra>
// kernel: tpu_custom_call.1
= control target key start
LH: loop header
LB: loop body
LE: loop exit
PB: predicated region body
PF: predicated region fallthrough
CT: control target
= control target key end

     0   :  { %10 = vsyncpa [#allocation4], 0  ;;  %s290_s15 = smov [#allocation3]   ;;  %s428_s0 = inlined_call_operand.<no memory space> [shape: f32[1], index: 0, kind: input, shape index: {}]   ;;  %s429_s1 = inlined_call_operand.vmem [shape: f32[56,1], index: 1, kind: input, shape index: {}]   ;;  %s430_s2 = inlined_call_operand.vmem [shape: f32[56,50], index: 2, kind: input, shape index: {}]   ;;  %s431_s3 = inlined_call_operand.hbm [shape: f32[56,50], index: 3, kind: input, shape index: {}]   ;;  %s432_s4 = inlined_call_operand.vmem [shape: f32[56,1], index: 4, kind: output, shape index: {}]  }
   0x1   :  { %s22_s16 = sshll.u32 %s290_s15, 4  ;;  %s266_s19 = scalar_lea.hbm %s431_s3, 896  ;;  %s23_s16 = int_to_ptr.vmem [resolvable:$true] %s22_s16 }
   0x2   :  { %p267_p0 = scmp.ne.s32.totalorder %s431_s3, %s266_s19  ;;  %p270_p1 = scmp.lt.u32.totalorder %s266_s19, %s431_s3 }
   0x4   :  { %p272_p2 = pnand %p270_p1, %p267_p0 }
   0x6   :  { %275 = shalt.err (!%p272_p2)
}
   0x7   :  { %s276_s24 = scalar_lea.vmem %s23_s16, 896  ;;  %p281_p4 = scmp.lt.s32.totalorder %s23_s16, %s23_s16 }
   0x8   :  { %p277_p3 = scmp.ne.s32.totalorder %s23_s16, %s276_s24  ;;  %p282_p5 = scmp.lt.s32.totalorder %s276_s24, %s276_s24 }
   0xa   :  { %p283_p6 = por %p282_p5, %p281_p4 }
   0xc   :  { %p284_p7 = pnand %p283_p6, %p277_p3 }
   0xe   :  { %287 = shalt.err (!%p284_p7)
}
   0xf   :  { %s291_s25 = smov 128   ;;  %s292_s26 = smov 8  }
  0x10   :  { %28 = dma.hbm_to_vmem [thread:$0]  %s431_s3, 896, %s23_s16, [#allocation4], %s291_s25, %s291_s25, %s292_s26  }
  0x11   :  { %288 = dma.done.wait [#allocation4], 896  }
  0x12   :  { %289 = vsyncadd [#allocation4], 4294966400  ;;  %v293_v0 = vmov 0   ;;  %v37_v1 = vld [vmem:[%s429_s1 + $0x10] sm:$0xff]  ;;  %v35_v2 = vld [vmem:[%s429_s1] sm:$0xff]  ;;  %s33_s18 = smul.f32 -0.5, %s428_s0 }
  0x13   :  { %237 = vset.pattern.permute.xlu1 %v293_v0  ;;  %236 = vset.pattern.permute.xlu0 %v293_v0  ;;  %v38_v3 = vld [vmem:[%s429_s1 + $0x18] sm:$0xff]  ;;  %v36_v4 = vld [vmem:[%s429_s1 + $0x8] sm:$0xff]  ;;  %v39_v6 = vld [vmem:[%s429_s1 + $0x20] sm:$0xff]  ;;  %vm113_vm0 = vcmask 408576   ;;  %vm219_vm1 = vcmask 7168  }
  0x14   :  { %68 = vperm.xlu1 %237, %v37_v1   ;;  %58 = vperm.xlu0 %236, %v35_v2   ;;  %v40_v5 = vld [vmem:[%s429_s1 + $0x28] sm:$0xff]  ;;  %v41_v7 = vld [vmem:[%s429_s1 + $0x30] sm:$0xff]  ;;  %v42_v8 = vld [vmem:[%s430_s2] sm:$0xff]  ;;  %s34_s23 = smul.f32 %s33_s18, %s428_s0 }
  0x15   :  { %v44_v9 = vld [vmem:[%s430_s2 + $0x10] sm:$0xff]  ;;  %v45_v14 = vld [vmem:[%s430_s2 + $0x18] sm:$0xff]  ;;  %v43_v15 = vld [vmem:[%s430_s2 + $0x8] sm:$0xff] }
  0x16   :  { %v105_v16 = vstv %s34_s23  ;;  %v47_v24 = vld [vmem:[%s430_s2 + $0x28] sm:$0xff]  ;;  %v46_v25 = vld [vmem:[%s430_s2 + $0x20] sm:$0xff]  ;;  %v48_v35 = vld [vmem:[%s430_s2 + $0x30] sm:$0xff] }
  0x18   :  { %73 = vperm.xlu1 %237, %v38_v3   ;;  %63 = vperm.xlu0 %236, %v36_v4  }
  0x1c   :  { %83 = vperm.xlu1 %237, %v40_v5   ;;  %78 = vperm.xlu0 %236, %v39_v6  }
  0x20   :  { %88 = vperm.xlu0 %236, %v41_v7  }
  0x93   :  { %v69_v10 = vpop.permute.xlu1 %68  ;;  %v59_v11 = vpop.permute.xlu0 %58 }
  0x94   :  { %v91_v12 = vsub.f32 %v59_v11, %v42_v8  ;;  %v93_v13 = vsub.f32 %v69_v10, %v44_v9 }
  0x96   :  { %v98_v17 = vmul.f32 %v91_v12, %v91_v12  ;;  %v100_v23 = vmul.f32 %v93_v13, %v93_v13 }
  0x97   :  { %v74_v18 = vpop.permute.xlu1 %73  ;;  %v64_v19 = vpop.permute.xlu0 %63 }
  0x98   :  { %v94_v20 = vsub.f32 %v74_v18, %v45_v14  ;;  %v92_v21 = vsub.f32 %v64_v19, %v43_v15  ;;  %v106_v22 = vmul.f32 %v105_v16, %v98_v17  ;;  %v108_v36 = vmul.f32 %v105_v16, %v100_v23  ;;  %v49_v17 = vld [vmem:[#allocation3] sm:$0xff]  ;;  %v50_v23 = vld [vmem:[#allocation3 + $0x8] sm:$0xff] }
  0x9a   :  { %v101_v26 = vmul.f32 %v94_v20, %v94_v20  ;;  %v99_v27 = vmul.f32 %v92_v21, %v92_v21  ;;  %v114_v28 = vsel %vm113_vm0, %v106_v22, -inf  ;;  %v120_v46 = vsel %vm113_vm0, %v108_v36, -inf }
  0x9b   :  { %v84_v29 = vpop.permute.xlu1 %83  ;;  %115 = vmax.xlane.f32.xlu1 %v114_v28  ;;  %v79_v30 = vpop.permute.xlu0 %78 }
  0x9c   :  { %v96_v31 = vsub.f32 %v84_v29, %v47_v24  ;;  %v95_v32 = vsub.f32 %v79_v30, %v46_v25  ;;  %v109_v33 = vmul.f32 %v105_v16, %v101_v26  ;;  %v107_v34 = vmul.f32 %v105_v16, %v99_v27  ;;  %v53_v29 = vld [vmem:[#allocation3 + $0x20] sm:$0xff]  ;;  %v52_v30 = vld [vmem:[#allocation3 + $0x18] sm:$0xff] }
  0x9e   :  { %v103_v37 = vmul.f32 %v96_v31, %v96_v31  ;;  %v102_v38 = vmul.f32 %v95_v32, %v95_v32  ;;  %v123_v39 = vsel %vm113_vm0, %v109_v33, -inf  ;;  %v117_v40 = vsel %vm113_vm0, %v107_v34, -inf }
  0x9f   :  { %124 = vmax.xlane.f32.xlu1 %v123_v39  ;;  %118 = vmax.xlane.f32.xlu0 %v117_v40  ;;  %v89_v41 = vpop.permute.xlu0 %88 }
  0xa0   :  { %v97_v42 = vsub.f32 %v89_v41, %v48_v35  ;;  %v111_v43 = vmul.f32 %v105_v16, %v103_v37  ;;  %v110_v47 = vmul.f32 %v105_v16, %v102_v38  ;;  %v55_v35 = vld [vmem:[#allocation3 + $0x30] sm:$0xff] }
  0xa2   :  { %v104_v44 = vmul.f32 %v97_v42, %v97_v42  ;;  %v129_v45 = vsel %vm113_vm0, %v111_v43, -inf  ;;  %v126_v48 = vsel %vm113_vm0, %v110_v47, -inf }
  0xa3   :  { %130 = vmax.xlane.f32.xlu1 %v129_v45  ;;  %121 = vmax.xlane.f32.xlu0 %v120_v46 }
  0xa4   :  { %v112_v49 = vmul.f32 %v105_v16, %v104_v44 }
  0xa6   :  { %v132_v50 = vsel %vm113_vm0, %v112_v49, -inf }
  0xa7   :  { %127 = vmax.xlane.f32.xlu0 %v126_v48 }
  0xab   :  { %133 = vmax.xlane.f32.xlu0 %v132_v50 }
 0x128   :  { %v116_v51 = vpop.xlane.xlu1 %115 }
 0x129   :  { %v135_v52 = vsub.f32 %v106_v22, %v116_v51  ;;  %v51_v22 = vld [vmem:[#allocation3 + $0x10] sm:$0xff] }
 0x12b   :  { %v142_v53 = vmul.f32 1.442695, %v135_v52 }
 0x12c   :  { %v125_v54 = vpop.xlane.xlu1 %124  ;;  %v119_v55 = vpop.xlane.xlu0 %118 }
 0x12d   :  { %238 = vpow2.f32 %v142_v53  ;;  %v138_v56 = vsub.f32 %v109_v33, %v125_v54  ;;  %v136_v57 = vsub.f32 %v107_v34, %v119_v55 }
 0x12f   :  { %v144_v58 = vmul.f32 1.442695, %v136_v57  ;;  %v148_v59 = vmul.f32 1.442695, %v138_v56 }
 0x130   :  { %v131_v60 = vpop.xlane.xlu1 %130  ;;  %v122_v61 = vpop.xlane.xlu0 %121 }
 0x131   :  { %v140_v62 = vsub.f32 %v111_v43, %v131_v60  ;;  %v137_v63 = vsub.f32 %v108_v36, %v122_v61  ;;  %240 = vpow2.f32 %v144_v58  ;;  %v54_v36 = vld [vmem:[#allocation3 + $0x28] sm:$0xff] }
 0x132   :  { %242 = vpow2.f32 %v148_v59 }
 0x133   :  { %v146_v0 = vmul.f32 1.442695, %v137_v63  ;;  %v152_v1 = vmul.f32 1.442695, %v140_v62 }
 0x134   :  { %v128_v2 = vpop.xlane.xlu0 %127 }
 0x135   :  { %v139_v3 = vsub.f32 %v110_v47, %v128_v2  ;;  %244 = vpow2.f32 %v146_v0 }
 0x136   :  { %246 = vpow2.f32 %v152_v1 }
 0x137   :  { %v239_v4 = vpop.eup %238  ;;  %v150_v5 = vmul.f32 1.442695, %v139_v3 }
 0x138   :  { %v134_v6 = vpop.xlane.xlu0 %133  ;;  %v156_v7 = vsel %vm113_vm0, %v239_v4, 0.0  ;;  %v177_v21 = vmul.f32 %v239_v4, %v49_v17 }
 0x139   :  { %248 = vpow2.f32 %v150_v5  ;;  %v141_v8 = vsub.f32 %v112_v49, %v134_v6  ;;  %157 = vadd.xlane.f32.xlu1 %v156_v7 }
 0x13a   :  { %v184_v26 = vsel %vm113_vm0, %v177_v21, 0.0 }
 0x13b   :  { %v154_v9 = vmul.f32 1.442695, %v141_v8  ;;  %v241_v10 = vpop.eup %240 }
 0x13c   :  { %v159_v11 = vsel %vm113_vm0, %v241_v10, 0.0  ;;  %v243_v12 = vpop.eup %242  ;;  %v178_v28 = vmul.f32 %v241_v10, %v50_v23 }
 0x13d   :  { %250 = vpow2.f32 %v154_v9  ;;  %160 = vadd.xlane.f32.xlu0 %v159_v11  ;;  %v165_v14 = vsel %vm113_vm0, %v243_v12, 0.0  ;;  %v180_v34 = vmul.f32 %v243_v12, %v52_v30 }
 0x13e   :  { %v187_v32 = vsel %vm113_vm0, %v178_v28, 0.0 }
 0x13f   :  { %v245_v13 = vpop.eup %244  ;;  %v193_v38 = vsel %vm113_vm0, %v180_v34, 0.0 }
 0x140   :  { %v162_v15 = vsel %vm113_vm0, %v245_v13, 0.0  ;;  %v247_v16 = vpop.eup %246  ;;  %v179_v27 = vmul.f32 %v245_v13, %v51_v22 }
 0x141   :  { %166 = vadd.xlane.f32.xlu0 %v165_v14  ;;  %163 = vadd.xlane.f32.xlu1 %v162_v15  ;;  %v171_v20 = vsel %vm113_vm0, %v247_v16, 0.0  ;;  %v182_v40 = vmul.f32 %v247_v16, %v54_v36 }
 0x142   :  { %v190_v31 = vsel %vm113_vm0, %v179_v27, 0.0 }
 0x143   :  { %v249_v18 = vpop.eup %248  ;;  %v199_v42 = vsel %vm113_vm0, %v182_v40, 0.0 }
 0x144   :  { %v168_v19 = vsel %vm113_vm0, %v249_v18, 0.0  ;;  %v181_v33 = vmul.f32 %v249_v18, %v53_v29 }
 0x145   :  { %172 = vadd.xlane.f32.xlu0 %v171_v20  ;;  %169 = vadd.xlane.f32.xlu1 %v168_v19 }
 0x146   :  { %v196_v37 = vsel %vm113_vm0, %v181_v33, 0.0 }
 0x147   :  { %v251_v24 = vpop.eup %250 }
 0x148   :  { %v174_v25 = vsel %vm113_vm0, %v251_v24, 0.0  ;;  %v183_v39 = vmul.f32 %v251_v24, %v55_v35 }
 0x149   :  { %185 = vadd.xlane.f32.xlu0 %v184_v26  ;;  %175 = vadd.xlane.f32.xlu1 %v174_v25 }
 0x14a   :  { %v202_v41 = vsel %vm113_vm0, %v183_v39, 0.0 }
 0x14d   :  { %191 = vadd.xlane.f32.xlu0 %v190_v31  ;;  %188 = vadd.xlane.f32.xlu1 %v187_v32 }
 0x151   :  { %197 = vadd.xlane.f32.xlu0 %v196_v37  ;;  %194 = vadd.xlane.f32.xlu1 %v193_v38 }
 0x155   :  { %203 = vadd.xlane.f32.xlu0 %v202_v41  ;;  %200 = vadd.xlane.f32.xlu1 %v199_v42 }
 0x1c6   :  { %v158_v43 = vpop.xlane.xlu1 %157 }
 0x1c7   :  { %252 = vrcp.f32 %v158_v43 }
 0x1ca   :  { %v161_v44 = vpop.xlane.xlu0 %160 }
 0x1ce   :  { %v164_v45 = vpop.xlane.xlu1 %163  ;;  %v167_v46 = vpop.xlane.xlu0 %166 }
 0x1cf   :  { %254 = vrcp.f32 %v164_v45 }
 0x1d0   :  { %256 = vrcp.f32 %v161_v44 }
 0x1d1   :  { %v253_v49 = vpop.eup %252 }
 0x1d2   :  { %v170_v47 = vpop.xlane.xlu1 %169  ;;  %v173_v48 = vpop.xlane.xlu0 %172 }
 0x1d3   :  { %258 = vrcp.f32 %v170_v47 }
 0x1d4   :  { %260 = vrcp.f32 %v167_v46 }
 0x1d6   :  { %v176_v50 = vpop.xlane.xlu1 %175  ;;  %v186_v51 = vpop.xlane.xlu0 %185 }
 0x1d7   :  { %262 = vrcp.f32 %v176_v50  ;;  %v212_v52 = vmul.f32 %v253_v49, %v186_v51 }
 0x1d8   :  { %264 = vrcp.f32 %v173_v48 }
 0x1d9   :  { %v255_v53 = vpop.eup %254  ;;  %220 = vst.msk [vmem:[%s432_s4] sm:$0xff] %vm219_vm1, %v212_v52 }
 0x1da   :  { %v257_v54 = vpop.eup %256  ;;  %v189_v55 = vpop.xlane.xlu1 %188 }
 0x1db   :  { %v192_v56 = vpop.xlane.xlu0 %191  ;;  %v213_v57 = vmul.f32 %v257_v54, %v189_v55 }
 0x1dc   :  { %v214_v58 = vmul.f32 %v255_v53, %v192_v56 }
 0x1dd   :  { %v259_v59 = vpop.eup %258  ;;  %221 = vst.msk [vmem:[%s432_s4 + $0x8] sm:$0xff] %vm219_vm1, %v213_v57 }
 0x1de   :  { %222 = vst.msk [vmem:[%s432_s4 + $0x10] sm:$0xff] %vm219_vm1, %v214_v58  ;;  %v261_v60 = vpop.eup %260  ;;  %v195_v61 = vpop.xlane.xlu1 %194 }
 0x1df   :  { %v198_v62 = vpop.xlane.xlu0 %197  ;;  %v215_v63 = vmul.f32 %v261_v60, %v195_v61 }
 0x1e0   :  { %v216_v0 = vmul.f32 %v259_v59, %v198_v62 }
 0x1e1   :  { %v263_v1 = vpop.eup %262  ;;  %223 = vst.msk [vmem:[%s432_s4 + $0x18] sm:$0xff] %vm219_vm1, %v215_v63 }
 0x1e2   :  { %224 = vst.msk [vmem:[%s432_s4 + $0x20] sm:$0xff] %vm219_vm1, %v216_v0  ;;  %v265_v2 = vpop.eup %264  ;;  %v201_v3 = vpop.xlane.xlu1 %200 }
 0x1e3   :  { %v204_v4 = vpop.xlane.xlu0 %203  ;;  %v217_v5 = vmul.f32 %v265_v2, %v201_v3 }
 0x1e4   :  { %v218_v6 = vmul.f32 %v263_v1, %v204_v4 }
 0x1e5   :  { %225 = vst.msk [vmem:[%s432_s4 + $0x28] sm:$0xff] %vm219_vm1, %v217_v5 }
 0x1e6   :  { %226 = vst.msk [vmem:[%s432_s4 + $0x30] sm:$0xff] %vm219_vm1, %v218_v6 }
 0x1e7   :  { %231 = vsyncpa [#allocation4], 1 }

</bundles_post_ra>
